<compile_context>
chip_gen: v6e
topology: v6e:2x2x1
jax: 0.10.0
libtpu: 0.0.40
codegen_flags: <defaults>
</compile_context>

<pallas_src>
import functools

import jax
import jax.numpy as jnp
from jax.experimental import pallas as pl
from jax.experimental.pallas import tpu as pltpu

_LANE = 128
_SUBLANE = 8
_MAX_COLS = 8192                    # cap on slab width (lane dimension)
_MAX_TILE_BYTES = 4 * 1024 * 1024   # per-buffer tile cap (v7x 64 MiB VMEM safe)
_VMEM_LIMIT = 48 * 1024 * 1024      # scoped VMEM limit; fits in/out dbl-buffers


def _copy_kernel(x_ref, o_ref):
    # Pure identity copy of the current (tile_rows, cols) block.
    o_ref[...] = x_ref[...]


def _pallas_identity_2d(slab):
    """Identity-copy a (R, C) slab (C a multiple of 128) through VMEM."""
    R, C = slab.shape
    itemsize = jnp.dtype(slab.dtype).itemsize

    if R <= _SUBLANE:
        # Block == full array dims -> exempt from the (8, 128) divisibility rule.
        tile_rows = R
    else:
        budget_rows = max(_SUBLANE, _MAX_TILE_BYTES // (C * itemsize))
        budget_rows = (budget_rows // _SUBLANE) * _SUBLANE
        tile_rows = min(budget_rows, (R // _SUBLANE) * _SUBLANE)
        # Prefer >= 2 grid steps when there is enough work so v7x's two
        # TensorCores both move bytes; measured ~neutral on 1-TC v5e/v6e.
        if tile_rows >= R and R >= 2 * _SUBLANE:
            half = -(-((R + 1) // 2) // _SUBLANE) * _SUBLANE
            tile_rows = max(_SUBLANE, min(tile_rows, half))

    grid = pl.cdiv(R, tile_rows)   # partial last block handled by Pallas
    nbytes = R * C * itemsize

    return pl.pallas_call(
        _copy_kernel,
        out_shape=jax.ShapeDtypeStruct((R, C), slab.dtype),
        grid_spec=pltpu.PrefetchScalarGridSpec(
            num_scalar_prefetch=0,
            grid=(grid,),
            in_specs=[pl.BlockSpec((tile_rows, C), lambda i: (i, 0))],
            out_specs=pl.BlockSpec((tile_rows, C), lambda i: (i, 0)),
        ),
        compiler_params=pltpu.CompilerParams(
            dimension_semantics=("parallel",),
            vmem_limit_bytes=_VMEM_LIMIT,
        ),
        cost_estimate=pl.CostEstimate(
            flops=0, transcendentals=0, bytes_accessed=2 * nbytes),
        # Identity copy: reuse the input HBM buffer for the output.
        input_output_aliases={0: 0},
    )(slab)


def _resolve_size(size, total):
    """Resolve a single -1 dimension like torch .view does."""
    size = list(size)
    if -1 in size:
        known = 1
        for s in size:
            if s != -1:
                known *= s
        size[size.index(-1)] = total // known
    out_elems = 1
    for s in size:
        out_elems *= s
    assert out_elems == total, "view size incompatible with number of elements"
    return tuple(size)


@functools.partial(jax.jit, static_argnums=(1,))
def view_forward(x, size):
    """Equivalent of torch.Tensor.view(size) for a contiguous tensor."""
    total = x.size
    size = _resolve_size(size, total)

    # Pick a lane-dense 2D factorization of the row-major element stream:
    # the widest multiple-of-128 divisor of `total` (<= _MAX_COLS), preferring
    # one that also leaves >= 8 rows (full sublane tiles).
    cols = 0
    for c in range(_MAX_COLS, 0, -_LANE):
        if total % c == 0:
            if cols == 0:
                cols = c                       # widest divisor (fallback)
            if total // c >= _SUBLANE:
                cols = c                       # widest divisor with >= 8 rows
                break

    if cols:
        # Fast path: zero padding passes (typical for NCHW CIFAR shapes,
        # where C*H*W is a multiple of 128).
        slab = x.reshape(total // cols, cols)
        out_slab = _pallas_identity_2d(slab)
        return out_slab.reshape(size)

    # Fallback: total not a multiple of 128 -> one jnp.pad + one slice.
    flat = x.reshape(-1)
    pad = (-total) % _LANE
    flat = jnp.pad(flat, (0, pad))
    slab = flat.reshape(flat.shape[0] // _LANE, _LANE)
    out_slab = _pallas_identity_2d(slab)
    return out_slab.reshape(-1)[:total].reshape(size)


class View:
    """Mirror of the PyTorch nn.Module: View(size)(x) == x.view(size)."""

    def __init__(self, size):
        self.size = tuple(size)

    def __call__(self, tensor):
        return view_forward(tensor, self.size)

    forward = __call__


if __name__ == "__main__":
    key = jax.random.PRNGKey(0)
    # NCHW input, small CIFAR-ish shape.
    x = jax.random.normal(key, (2, 4, 16, 16), dtype=jnp.float32)

    # Typical CIFAR10 usage: View((-1, C*H*W)) flattens feature maps before FC.
    view = View((-1, 4 * 16 * 16))
    out = view.forward(x)
    out = jax.block_until_ready(out)

    # Verify exact view semantics (row-major) against plain reshape.
    ref = x.reshape(2, 4 * 16 * 16)
    assert out.shape == (2, 1024)
    assert out.dtype == x.dtype
    assert jnp.array_equal(out, ref)

    print("KERNEL_OK")
</pallas_src>

<mosaic_0001>
module attributes {stable_mosaic.version = 11 : i64} {
  func.func @_copy_kernel(%arg0: i32, %arg1: memref<8x256xf32, #tpu.memory_space<vmem>>, %arg2: memref<8x256xf32, #tpu.memory_space<vmem>>) attributes {dimension_semantics = [#tpu.dimension_semantics<parallel>], iteration_bounds = array<i64: 1>, scalar_prefetch = 0 : i64, scratch_operands = 0 : i64, tpu.core_type = #tpu.core_type<tc>, window_params = [{transform_indices = @transform_0, window_bounds = array<i64: 8, 256>}, {transform_indices = @transform_1, window_bounds = array<i64: 8, 256>}]} {
    %c0 = arith.constant 0 : index
    %c0_0 = arith.constant 0 : index
    %0 = vector.load %arg1[%c0, %c0_0] : memref<8x256xf32, #tpu.memory_space<vmem>>, vector<8x256xf32>
    %c0_1 = arith.constant 0 : index
    %c0_2 = arith.constant 0 : index
    %1 = vector.load %arg2[%c0_1, %c0_2] : memref<8x256xf32, #tpu.memory_space<vmem>>, vector<8x256xf32>
    tpu.vector_store %arg2[%c0_1, %c0_2], %0 {strides = array<i32>} : memref<8x256xf32, #tpu.memory_space<vmem>>, vector<8x256xf32>,
    return
  }
  func.func @transform_0(%arg0: i32) -> (i32, i32) {
    %c0_i32 = arith.constant 0 : i32
    %c0_i32_0 = arith.constant 0 : i32
    return %arg0, %c0_i32 : i32, i32
  }
  func.func @transform_1(%arg0: i32) -> (i32, i32) {
    %c0_i32 = arith.constant 0 : i32
    %c0_i32_0 = arith.constant 0 : i32
    return %arg0, %c0_i32 : i32, i32
  }
}

</mosaic_0001>

<bundles_post_ra>
// kernel: view_forward.1
= control target key start
LH: loop header
LB: loop body
LE: loop exit
PB: predicated region body
PF: predicated region fallthrough
CT: control target
= control target key end

     0   :  { %s38_s0 = inlined_call_operand.vmem [shape: f32[8,256], index: 0, kind: input, shape index: {}, may-alias: {0,1}]   ;;  %s39_s1 = inlined_call_operand.vmem [shape: f32[8,256], index: 1, kind: output, shape index: {}, may-alias: {0,1}]  }
   0x1   :  { %v8_v0 = vld [vmem:[%s38_s0] sm:$0xff]  ;;  %v9_v1 = vld [vmem:[%s38_s0 + $0x8] sm:$0xff] }
   0x2   :  { %10 = vst [vmem:[%s39_s1] sm:$0xff] %v8_v0  ;;  %11 = vst [vmem:[%s39_s1 + $0x8] sm:$0xff] %v9_v1 }

</bundles_post_ra>
